<compile_context>
chip_gen: v6e
topology: v6e:2x2x1
jax: 0.10.0
libtpu: 0.0.40
codegen_flags: <defaults>
</compile_context>

<pallas_src>
import jax
import jax.numpy as jnp
from jax.experimental import pallas as pl
from jax.experimental.pallas import tpu as pltpu

NEG_SLOPE = 0.2        # GATv2Conv default negative_slope
SCORE_CHUNK = 128      # cap on feature-chunk width of the [N, N, chunk] score tile
MASK_NEG = 1e30        # f32-safe "minus infinity" for masked softmax entries


def _gatv2_layer(h, adj, w, aux):
    """One GATv2Conv layer (heads=1, concat=True), fused-weight form.

    h   : [N, Fin]   node features
    adj : [N, N]     adj[i, j] = 1 iff edge j -> i (self-loops included)
    w   : [Fin, 2C]  [lin_l | lin_r] weights fused along the output dim
    aux : [4, C]     rows = (lin_l bias, lin_r bias, att vector, output bias)
    returns [N, C]
    """
    n = h.shape[0]
    c = w.shape[1] // 2

    # single fused matmul for both linear transforms
    xlr = jnp.dot(h, w, preferred_element_type=jnp.float32)      # [N, 2C]
    xl = xlr[:, :c] + aux[0:1, :]                                 # W_l x_j + b_l
    xr = xlr[:, c:] + aux[1:2, :]                                 # W_r x_i + b_r
    att = aux[2:3, :]
    bias = aux[3:4, :]

    # pairwise scores e[i, j] = a . leaky_relu(W_l x_j + W_r x_i), accumulated
    # over feature chunks so the [N, N, chunk] intermediate stays bounded.
    e = jnp.zeros((n, n), jnp.float32)
    for c0 in range(0, c, SCORE_CHUNK):
        c1 = min(c0 + SCORE_CHUNK, c)
        s = xr[:, None, c0:c1] + xl[None, :, c0:c1]               # [N, N, cb]
        s = jnp.where(s > 0, s, NEG_SLOPE * s)                    # leaky_relu
        e = e + jnp.sum(s * att[:, None, c0:c1], axis=-1)

    # masked softmax over incoming neighbours j for each target i.
    # Additive mask: masked entries drop to ~-1e30, so exp underflows to
    # exactly 0 after max-subtraction (no second select needed).
    e = e + (adj - 1.0) * MASK_NEG
    e = e - jnp.max(e, axis=1, keepdims=True)
    p = jnp.exp(e)                                                # [N, N]

    # aggregation and softmax row-sum both on the MXU; normalize the [N, C]
    # result (N*C divides instead of N*N).
    agg = jnp.dot(p, xl, preferred_element_type=jnp.float32)      # [N, C]
    denom = jnp.dot(p, jnp.ones((n, 1), jnp.float32),
                    preferred_element_type=jnp.float32)           # [N, 1]
    return agg / denom + bias


def actor_kernel(x_ref, adj_ref, w1_ref, aux1_ref, w2_ref, aux2_ref, out_ref):
    x = x_ref[...]
    adj = adj_ref[...]

    # gat1 + ELU (alpha = 1.0); F.dropout(training=False) is identity in eval.
    h = _gatv2_layer(x, adj, w1_ref[...], aux1_ref[...])
    h = jnp.where(h > 0, h, jnp.exp(h) - 1.0)

    # gat2
    z = _gatv2_layer(h, adj, w2_ref[...], aux2_ref[...])

    # log_softmax over dim=1 (actions)
    z = z - jnp.max(z, axis=1, keepdims=True)
    out_ref[...] = z - jnp.log(jnp.sum(jnp.exp(z), axis=1, keepdims=True))


def actor_forward(x, adj, params):
    """x: [B, N, F], adj: [B, N, N]  ->  log-probabilities [B, N, A]."""
    b, n, f = x.shape
    w1, aux1, w2, aux2 = params["w1"], params["aux1"], params["w2"], params["aux2"]
    n_actions = aux2.shape[-1]

    def batch_spec(shape):
        return pl.BlockSpec((None,) + shape, lambda i: (i, 0, 0))

    def full_spec(arr):
        return pl.BlockSpec(arr.shape, lambda i: (0,) * arr.ndim)

    return pl.pallas_call(
        actor_kernel,
        out_shape=jax.ShapeDtypeStruct((b, n, n_actions), jnp.float32),
        grid=(b,),
        in_specs=[
            batch_spec((n, f)),        # x
            batch_spec((n, n)),        # adj
            full_spec(w1), full_spec(aux1),
            full_spec(w2), full_spec(aux2),
        ],
        out_specs=batch_spec((n, n_actions)),
        compiler_params=pltpu.CompilerParams(
            dimension_semantics=("parallel",)),
    )(x, adj, w1, aux1, w2, aux2)


def glorot(key, shape):
    fan_in, fan_out = shape[-2], shape[-1]
    limit = (6.0 / (fan_in + fan_out)) ** 0.5
    return jax.random.uniform(key, shape, jnp.float32, -limit, limit)


def init_params(key, input_dims, hidden_dims, n_actions):
    ks = jax.random.split(key, 6)
    wl1 = glorot(ks[0], (input_dims, hidden_dims))
    wr1 = glorot(ks[1], (input_dims, hidden_dims))
    att1 = glorot(ks[2], (1, hidden_dims))
    wl2 = glorot(ks[3], (hidden_dims, n_actions))
    wr2 = glorot(ks[4], (hidden_dims, n_actions))
    att2 = glorot(ks[5], (1, n_actions))
    zh = jnp.zeros((1, hidden_dims), jnp.float32)
    za = jnp.zeros((1, n_actions), jnp.float32)
    return {
        # gat1: GATv2Conv(input_dims, hidden_dims) -- fused [lin_l | lin_r]
        "w1": jnp.concatenate([wl1, wr1], axis=1),           # [Fin, 2H]
        "aux1": jnp.concatenate([zh, zh, att1, zh], axis=0),  # [4, H]
        # gat2: GATv2Conv(hidden_dims, n_actions)
        "w2": jnp.concatenate([wl2, wr2], axis=1),            # [H, 2A]
        "aux2": jnp.concatenate([za, za, att2, za], axis=0),  # [4, A]
    }


def edge_index_to_adj(edge_index, n_nodes):
    """adj[i, j] = 1 iff edge j -> i; self-loops added (GATv2 add_self_loops)."""
    src, dst = edge_index[0], edge_index[1]
    adj = jnp.zeros((n_nodes, n_nodes), jnp.float32).at[dst, src].set(1.0)
    return jnp.maximum(adj, jnp.eye(n_nodes, dtype=jnp.float32))


if __name__ == "__main__":
    BATCH = 2          # graphs per call (grid axis -> both TCs on v7x)
    N_NODES = 8        # graph nodes
    INPUT_DIMS = 4     # node feature dim
    HIDDEN_DIMS = 32
    N_ACTIONS = 4

    key = jax.random.PRNGKey(0)
    k_x, k_p = jax.random.split(key)

    # node features  [B, N, F]
    x = jax.random.normal(k_x, (BATCH, N_NODES, INPUT_DIMS), jnp.float32)

    # simple bidirectional ring graph, edge_index [2, E] (no duplicate edges)
    src = jnp.concatenate([jnp.arange(N_NODES), (jnp.arange(N_NODES) + 1) % N_NODES])
    dst = jnp.concatenate([(jnp.arange(N_NODES) + 1) % N_NODES, jnp.arange(N_NODES)])
    edge_index = jnp.stack([src, dst]).astype(jnp.int32)
    adj_one = edge_index_to_adj(edge_index, N_NODES)
    adj = jnp.broadcast_to(adj_one, (BATCH, N_NODES, N_NODES))

    params = init_params(k_p, INPUT_DIMS, HIDDEN_DIMS, N_ACTIONS)

    log_probs = actor_forward(x, adj, params)   # [B, N, n_actions] log-probs
    jax.block_until_ready(log_probs)

    assert log_probs.shape == (BATCH, N_NODES, N_ACTIONS)
    # sanity: rows of exp(log_probs) sum to 1
    assert jnp.allclose(jnp.sum(jnp.exp(log_probs), axis=-1), 1.0, atol=1e-4)
    print("KERNEL_OK")
</pallas_src>

<mosaic_0001>
module attributes {stable_mosaic.version = 11 : i64} {
  func.func @actor_kernel(%arg0: i32, %arg1: memref<1x8x4xf32, #tpu.memory_space<vmem>>, %arg2: memref<1x8x8xf32, #tpu.memory_space<vmem>>, %arg3: memref<4x64xf32, #tpu.memory_space<vmem>>, %arg4: memref<4x32xf32, #tpu.memory_space<vmem>>, %arg5: memref<32x8xf32, #tpu.memory_space<vmem>>, %arg6: memref<4x4xf32, #tpu.memory_space<vmem>>, %arg7: memref<1x8x4xf32, #tpu.memory_space<vmem>>) attributes {dimension_semantics = [#tpu.dimension_semantics<parallel>], iteration_bounds = array<i64: 2>, scalar_prefetch = 0 : i64, scratch_operands = 0 : i64, tpu.core_type = #tpu.core_type<tc>, window_params = [{transform_indices = @transform_0, window_bounds = array<i64: 1, 8, 4>}, {transform_indices = @transform_1, window_bounds = array<i64: 1, 8, 8>}, {pipeline_mode = #tpu.pipeline_mode<synchronous>, transform_indices = @transform_2, window_bounds = array<i64: 4, 64>}, {pipeline_mode = #tpu.pipeline_mode<synchronous>, transform_indices = @transform_3, window_bounds = array<i64: 4, 32>}, {pipeline_mode = #tpu.pipeline_mode<synchronous>, transform_indices = @transform_4, window_bounds = array<i64: 32, 8>}, {pipeline_mode = #tpu.pipeline_mode<synchronous>, transform_indices = @transform_5, window_bounds = array<i64: 4, 4>}, {transform_indices = @transform_6, window_bounds = array<i64: 1, 8, 4>}]} {
    %c0 = arith.constant 0 : index
    %c0_0 = arith.constant 0 : index
    %c0_1 = arith.constant 0 : index
    %0 = vector.load %arg1[%c0, %c0_0, %c0_1] : memref<1x8x4xf32, #tpu.memory_space<vmem>>, vector<1x8x4xf32>
    %1 = vector.shape_cast %0 : vector<1x8x4xf32> to vector<8x4xf32>
    %c0_2 = arith.constant 0 : index
    %c0_3 = arith.constant 0 : index
    %c0_4 = arith.constant 0 : index
    %2 = vector.load %arg2[%c0_2, %c0_3, %c0_4] : memref<1x8x8xf32, #tpu.memory_space<vmem>>, vector<1x8x8xf32>
    %3 = vector.shape_cast %2 : vector<1x8x8xf32> to vector<8x8xf32>
    %c0_5 = arith.constant 0 : index
    %c0_6 = arith.constant 0 : index
    %4 = vector.load %arg3[%c0_5, %c0_6] : memref<4x64xf32, #tpu.memory_space<vmem>>, vector<4x64xf32>
    %c0_7 = arith.constant 0 : index
    %c0_8 = arith.constant 0 : index
    %5 = vector.load %arg4[%c0_7, %c0_8] : memref<4x32xf32, #tpu.memory_space<vmem>>, vector<4x32xf32>
    %cst = arith.constant dense<0.000000e+00> : vector<8x64xf32>
    %6 = tpu.matmul %1, %4, %cst {dimension_numbers = #tpu.dot_dimension_numbers<[1], [0], [0], [1], [0, 0, 1, 1], [], []>} : vector<8x4xf32>, vector<4x64xf32>, vector<8x64xf32> -> vector<8x64xf32>
    %7 = vector.extract_strided_slice %6 {offsets = [0, 0], sizes = [8, 32], strides = [1, 1]} : vector<8x64xf32> to vector<8x32xf32>
    %8 = vector.extract_strided_slice %5 {offsets = [0, 0], sizes = [1, 32], strides = [1, 1]} : vector<4x32xf32> to vector<1x32xf32>
    %9 = vector.broadcast %8 : vector<1x32xf32> to vector<8x32xf32>
    %10 = arith.addf %7, %9 : vector<8x32xf32>
    %11 = vector.extract_strided_slice %6 {offsets = [0, 32], sizes = [8, 32], strides = [1, 1]} : vector<8x64xf32> to vector<8x32xf32>
    %12 = vector.extract_strided_slice %5 {offsets = [1, 0], sizes = [1, 32], strides = [1, 1]} : vector<4x32xf32> to vector<1x32xf32>
    %13 = vector.broadcast %12 : vector<1x32xf32> to vector<8x32xf32>
    %14 = arith.addf %11, %13 : vector<8x32xf32>
    %15 = vector.extract_strided_slice %5 {offsets = [2, 0], sizes = [1, 32], strides = [1, 1]} : vector<4x32xf32> to vector<1x32xf32>
    %16 = vector.extract_strided_slice %5 {offsets = [3, 0], sizes = [1, 32], strides = [1, 1]} : vector<4x32xf32> to vector<1x32xf32>
    %cst_9 = arith.constant 0.000000e+00 : f32
    %17 = vector.broadcast %cst_9 : f32 to vector<8x8xf32>
    %18 = vector.shape_cast %14 : vector<8x32xf32> to vector<8x1x32xf32>
    %19 = vector.shape_cast %10 : vector<8x32xf32> to vector<1x8x32xf32>
    %20 = vector.broadcast %18 : vector<8x1x32xf32> to vector<8x8x32xf32>
    %21 = vector.broadcast %19 : vector<1x8x32xf32> to vector<8x8x32xf32>
    %22 = arith.addf %20, %21 : vector<8x8x32xf32>
    %cst_10 = arith.constant 0.000000e+00 : f32
    %23 = vector.broadcast %cst_10 : f32 to vector<8x8x32xf32>
    %24 = arith.cmpf ogt, %22, %23 : vector<8x8x32xf32>
    %cst_11 = arith.constant 2.000000e-01 : f32
    %25 = vector.broadcast %cst_11 : f32 to vector<8x8x32xf32>
    %26 = arith.mulf %25, %22 : vector<8x8x32xf32>
    %27 = arith.select %24, %22, %26 : vector<8x8x32xi1>, vector<8x8x32xf32>
    %28 = vector.shape_cast %15 : vector<1x32xf32> to vector<1x1x32xf32>
    %29 = vector.broadcast %28 : vector<1x1x32xf32> to vector<8x8x32xf32>
    %30 = arith.mulf %27, %29 : vector<8x8x32xf32>
    %cst_12 = arith.constant dense<0.000000e+00> : vector<8x8xf32>
    %31 = vector.multi_reduction <add>, %30, %cst_12 [2] : vector<8x8x32xf32> to vector<8x8xf32>
    %32 = arith.addf %17, %31 : vector<8x8xf32>
    %cst_13 = arith.constant 1.000000e+00 : f32
    %33 = vector.broadcast %cst_13 : f32 to vector<8x8xf32>
    %34 = arith.subf %3, %33 : vector<8x8xf32>
    %cst_14 = arith.constant 1.000000e+30 : f32
    %35 = vector.broadcast %cst_14 : f32 to vector<8x8xf32>
    %36 = arith.mulf %34, %35 : vector<8x8xf32>
    %37 = arith.addf %32, %36 : vector<8x8xf32>
    %cst_15 = arith.constant dense<0xFF800000> : vector<8xf32>
    %38 = vector.multi_reduction <maximumf>, %37, %cst_15 [1] : vector<8x8xf32> to vector<8xf32>
    %39 = vector.shape_cast %38 : vector<8xf32> to vector<8x1xf32>
    %40 = vector.broadcast %39 : vector<8x1xf32> to vector<8x8xf32>
    %41 = arith.subf %37, %40 : vector<8x8xf32>
    %42 = math.exp %41 : vector<8x8xf32>
    %cst_16 = arith.constant dense<0.000000e+00> : vector<8x32xf32>
    %43 = tpu.matmul %42, %10, %cst_16 {dimension_numbers = #tpu.dot_dimension_numbers<[1], [0], [0], [1], [0, 0, 1, 1], [], []>} : vector<8x8xf32>, vector<8x32xf32>, vector<8x32xf32> -> vector<8x32xf32>
    %cst_17 = arith.constant 1.000000e+00 : f32
    %44 = vector.broadcast %cst_17 : f32 to vector<8x1xf32>
    %cst_18 = arith.constant dense<0.000000e+00> : vector<8x1xf32>
    %45 = tpu.matmul %42, %44, %cst_18 {dimension_numbers = #tpu.dot_dimension_numbers<[1], [0], [0], [1], [0, 0, 1, 1], [], []>} : vector<8x8xf32>, vector<8x1xf32>, vector<8x1xf32> -> vector<8x1xf32>
    %46 = vector.broadcast %45 : vector<8x1xf32> to vector<8x32xf32>
    %47 = arith.divf %43, %46 : vector<8x32xf32>
    %48 = vector.broadcast %16 : vector<1x32xf32> to vector<8x32xf32>
    %49 = arith.addf %47, %48 : vector<8x32xf32>
    %cst_19 = arith.constant 0.000000e+00 : f32
    %50 = vector.broadcast %cst_19 : f32 to vector<8x32xf32>
    %51 = arith.cmpf ogt, %49, %50 : vector<8x32xf32>
    %52 = math.exp %49 : vector<8x32xf32>
    %cst_20 = arith.constant 1.000000e+00 : f32
    %53 = vector.broadcast %cst_20 : f32 to vector<8x32xf32>
    %54 = arith.subf %52, %53 : vector<8x32xf32>
    %55 = arith.select %51, %49, %54 : vector<8x32xi1>, vector<8x32xf32>
    %c0_21 = arith.constant 0 : index
    %c0_22 = arith.constant 0 : index
    %56 = vector.load %arg5[%c0_21, %c0_22] : memref<32x8xf32, #tpu.memory_space<vmem>>, vector<32x8xf32>
    %c0_23 = arith.constant 0 : index
    %c0_24 = arith.constant 0 : index
    %57 = vector.load %arg6[%c0_23, %c0_24] : memref<4x4xf32, #tpu.memory_space<vmem>>, vector<4x4xf32>
    %cst_25 = arith.constant dense<0.000000e+00> : vector<8x8xf32>
    %58 = tpu.matmul %55, %56, %cst_25 {dimension_numbers = #tpu.dot_dimension_numbers<[1], [0], [0], [1], [0, 0, 1, 1], [], []>} : vector<8x32xf32>, vector<32x8xf32>, vector<8x8xf32> -> vector<8x8xf32>
    %59 = vector.extract_strided_slice %58 {offsets = [0, 0], sizes = [8, 4], strides = [1, 1]} : vector<8x8xf32> to vector<8x4xf32>
    %60 = vector.extract_strided_slice %57 {offsets = [0, 0], sizes = [1, 4], strides = [1, 1]} : vector<4x4xf32> to vector<1x4xf32>
    %61 = vector.broadcast %60 : vector<1x4xf32> to vector<8x4xf32>
    %62 = arith.addf %59, %61 : vector<8x4xf32>
    %63 = vector.extract_strided_slice %58 {offsets = [0, 4], sizes = [8, 4], strides = [1, 1]} : vector<8x8xf32> to vector<8x4xf32>
    %64 = vector.extract_strided_slice %57 {offsets = [1, 0], sizes = [1, 4], strides = [1, 1]} : vector<4x4xf32> to vector<1x4xf32>
    %65 = vector.broadcast %64 : vector<1x4xf32> to vector<8x4xf32>
    %66 = arith.addf %63, %65 : vector<8x4xf32>
    %67 = vector.extract_strided_slice %57 {offsets = [2, 0], sizes = [1, 4], strides = [1, 1]} : vector<4x4xf32> to vector<1x4xf32>
    %68 = vector.extract_strided_slice %57 {offsets = [3, 0], sizes = [1, 4], strides = [1, 1]} : vector<4x4xf32> to vector<1x4xf32>
    %cst_26 = arith.constant 0.000000e+00 : f32
    %69 = vector.broadcast %cst_26 : f32 to vector<8x8xf32>
    %70 = vector.shape_cast %66 : vector<8x4xf32> to vector<8x1x4xf32>
    %71 = vector.shape_cast %62 : vector<8x4xf32> to vector<1x8x4xf32>
    %72 = vector.broadcast %70 : vector<8x1x4xf32> to vector<8x8x4xf32>
    %73 = vector.broadcast %71 : vector<1x8x4xf32> to vector<8x8x4xf32>
    %74 = arith.addf %72, %73 : vector<8x8x4xf32>
    %cst_27 = arith.constant 0.000000e+00 : f32
    %75 = vector.broadcast %cst_27 : f32 to vector<8x8x4xf32>
    %76 = arith.cmpf ogt, %74, %75 : vector<8x8x4xf32>
    %cst_28 = arith.constant 2.000000e-01 : f32
    %77 = vector.broadcast %cst_28 : f32 to vector<8x8x4xf32>
    %78 = arith.mulf %77, %74 : vector<8x8x4xf32>
    %79 = arith.select %76, %74, %78 : vector<8x8x4xi1>, vector<8x8x4xf32>
    %80 = vector.shape_cast %67 : vector<1x4xf32> to vector<1x1x4xf32>
    %81 = vector.broadcast %80 : vector<1x1x4xf32> to vector<8x8x4xf32>
    %82 = arith.mulf %79, %81 : vector<8x8x4xf32>
    %cst_29 = arith.constant dense<0.000000e+00> : vector<8x8xf32>
    %83 = vector.multi_reduction <add>, %82, %cst_29 [2] : vector<8x8x4xf32> to vector<8x8xf32>
    %84 = arith.addf %69, %83 : vector<8x8xf32>
    %cst_30 = arith.constant 1.000000e+00 : f32
    %85 = vector.broadcast %cst_30 : f32 to vector<8x8xf32>
    %86 = arith.subf %3, %85 : vector<8x8xf32>
    %cst_31 = arith.constant 1.000000e+30 : f32
    %87 = vector.broadcast %cst_31 : f32 to vector<8x8xf32>
    %88 = arith.mulf %86, %87 : vector<8x8xf32>
    %89 = arith.addf %84, %88 : vector<8x8xf32>
    %cst_32 = arith.constant dense<0xFF800000> : vector<8xf32>
    %90 = vector.multi_reduction <maximumf>, %89, %cst_32 [1] : vector<8x8xf32> to vector<8xf32>
    %91 = vector.shape_cast %90 : vector<8xf32> to vector<8x1xf32>
    %92 = vector.broadcast %91 : vector<8x1xf32> to vector<8x8xf32>
    %93 = arith.subf %89, %92 : vector<8x8xf32>
    %94 = math.exp %93 : vector<8x8xf32>
    %cst_33 = arith.constant dense<0.000000e+00> : vector<8x4xf32>
    %95 = tpu.matmul %94, %62, %cst_33 {dimension_numbers = #tpu.dot_dimension_numbers<[1], [0], [0], [1], [0, 0, 1, 1], [], []>} : vector<8x8xf32>, vector<8x4xf32>, vector<8x4xf32> -> vector<8x4xf32>
    %cst_34 = arith.constant 1.000000e+00 : f32
    %96 = vector.broadcast %cst_34 : f32 to vector<8x1xf32>
    %cst_35 = arith.constant dense<0.000000e+00> : vector<8x1xf32>
    %97 = tpu.matmul %94, %96, %cst_35 {dimension_numbers = #tpu.dot_dimension_numbers<[1], [0], [0], [1], [0, 0, 1, 1], [], []>} : vector<8x8xf32>, vector<8x1xf32>, vector<8x1xf32> -> vector<8x1xf32>
    %98 = vector.broadcast %97 : vector<8x1xf32> to vector<8x4xf32>
    %99 = arith.divf %95, %98 : vector<8x4xf32>
    %100 = vector.broadcast %68 : vector<1x4xf32> to vector<8x4xf32>
    %101 = arith.addf %99, %100 : vector<8x4xf32>
    %cst_36 = arith.constant dense<0xFF800000> : vector<8xf32>
    %102 = vector.multi_reduction <maximumf>, %101, %cst_36 [1] : vector<8x4xf32> to vector<8xf32>
    %103 = vector.shape_cast %102 : vector<8xf32> to vector<8x1xf32>
    %104 = vector.broadcast %103 : vector<8x1xf32> to vector<8x4xf32>
    %105 = arith.subf %101, %104 : vector<8x4xf32>
    %106 = math.exp %105 : vector<8x4xf32>
    %cst_37 = arith.constant dense<0.000000e+00> : vector<8xf32>
    %107 = vector.multi_reduction <add>, %106, %cst_37 [1] : vector<8x4xf32> to vector<8xf32>
    %108 = vector.shape_cast %107 : vector<8xf32> to vector<8x1xf32>
    %109 = math.log %108 : vector<8x1xf32>
    %110 = vector.broadcast %109 : vector<8x1xf32> to vector<8x4xf32>
    %111 = arith.subf %105, %110 : vector<8x4xf32>
    %c0_38 = arith.constant 0 : index
    %c0_39 = arith.constant 0 : index
    %c0_40 = arith.constant 0 : index
    %112 = vector.load %arg7[%c0_38, %c0_39, %c0_40] : memref<1x8x4xf32, #tpu.memory_space<vmem>>, vector<1x8x4xf32>
    %113 = vector.shape_cast %112 : vector<1x8x4xf32> to vector<8x4xf32>
    %114 = vector.shape_cast %111 : vector<8x4xf32> to vector<1x8x4xf32>
    tpu.vector_store %arg7[%c0_38, %c0_39, %c0_40], %114 {strides = array<i32>} : memref<1x8x4xf32, #tpu.memory_space<vmem>>, vector<1x8x4xf32>,
    return
  }
  func.func @transform_0(%arg0: i32) -> (i32, i32, i32) {
    %c0_i32 = arith.constant 0 : i32
    %c0_i32_0 = arith.constant 0 : i32
    %c0_i32_1 = arith.constant 0 : i32
    return %arg0, %c0_i32, %c0_i32_0 : i32, i32, i32
  }
  func.func @transform_1(%arg0: i32) -> (i32, i32, i32) {
    %c0_i32 = arith.constant 0 : i32
    %c0_i32_0 = arith.constant 0 : i32
    %c0_i32_1 = arith.constant 0 : i32
    return %arg0, %c0_i32, %c0_i32_0 : i32, i32, i32
  }
  func.func @transform_2(%arg0: i32) -> (i32, i32) {
    %c0_i32 = arith.constant 0 : i32
    %c0_i32_0 = arith.constant 0 : i32
    %c0_i32_1 = arith.constant 0 : i32
    return %c0_i32, %c0_i32_0 : i32, i32
  }
  func.func @transform_3(%arg0: i32) -> (i32, i32) {
    %c0_i32 = arith.constant 0 : i32
    %c0_i32_0 = arith.constant 0 : i32
    %c0_i32_1 = arith.constant 0 : i32
    return %c0_i32, %c0_i32_0 : i32, i32
  }
  func.func @transform_4(%arg0: i32) -> (i32, i32) {
    %c0_i32 = arith.constant 0 : i32
    %c0_i32_0 = arith.constant 0 : i32
    %c0_i32_1 = arith.constant 0 : i32
    return %c0_i32, %c0_i32_0 : i32, i32
  }
  func.func @transform_5(%arg0: i32) -> (i32, i32) {
    %c0_i32 = arith.constant 0 : i32
    %c0_i32_0 = arith.constant 0 : i32
    %c0_i32_1 = arith.constant 0 : i32
    return %c0_i32, %c0_i32_0 : i32, i32
  }
  func.func @transform_6(%arg0: i32) -> (i32, i32, i32) {
    %c0_i32 = arith.constant 0 : i32
    %c0_i32_0 = arith.constant 0 : i32
    %c0_i32_1 = arith.constant 0 : i32
    return %arg0, %c0_i32, %c0_i32_0 : i32, i32, i32
  }
}

</mosaic_0001>

<bundles_post_ra>
// kernel: tpu_custom_call.1
= control target key start
LH: loop header
LB: loop body
LE: loop exit
PB: predicated region body
PF: predicated region fallthrough
CT: control target
= control target key end

     0   :  { %s1954_s21 = smov 0   ;;  %s2282_s0 = inlined_call_operand.vmem [shape: f32[2,8,4], index: 0, kind: input, shape index: {}]   ;;  %s2283_s1 = inlined_call_operand.vmem [shape: f32[2,8,8], index: 1, kind: input, shape index: {}]   ;;  %s2284_s2 = inlined_call_operand.vmem [shape: f32[4,64], index: 2, kind: input, shape index: {}]   ;;  %s2285_s3 = inlined_call_operand.vmem [shape: f32[4,32], index: 3, kind: input, shape index: {}]   ;;  %s2286_s4 = inlined_call_operand.vmem [shape: f32[32,8], index: 4, kind: input, shape index: {}]   ;;  %s2287_s5 = inlined_call_operand.vmem [shape: f32[4,4], index: 5, kind: input, shape index: {}]   ;;  %s2288_s6 = inlined_call_operand.vmem [shape: f32[2,8,4], index: 6, kind: output, shape index: {}]  }
   0x1 LB: > { %s1771_s22 = sadd.s32 4294967295, %s1908_s21   ;;  %p1775_p0 = scmp.ge.s32.totalorder %s1908_s21, 1  ;;  %s1908_s21 = sphi %s1954_s21, %s16_s21  }
   0x2   : > { %p220_p1 = scmp.lt.s32.totalorder %s1908_s21, 3 }
   0x4   : > { %p221_p2 = pnand %p1775_p0, %p220_p1 }
   0x5   : > { %p252_p3 = scmp.lt.s32.totalorder (!%p221_p2), %s1771_s22, 1  ;;  %s1912_s7 = smov (!%p221_p2), 32  }
   0x6   : > { %224 = sbr.rel (%p221_p2) target bundleno = 3089 (0xc11), region = 44  ;;  %s1914_s11 = smov (!%p221_p2), 96  }
   0x7   : > { %s1917_s23 = smov (!%p221_p2), 4   ;;  %s1918_s24 = smov (!%p221_p2), 124  }
   0xb   : > { %v266_v0 = vld [vmem:[%s2284_s2] sm:$0xf]  ;;  %vm272_vm0 = vcmask 1043456   ;;  %v346_v1 = vlaneseq  ;;  %v1910_v2 = vmov 0.0   ;;  %vm1911_vm1 = vmmov 0   ;;  %s2290_s22 = smov (!%p252_p3, %s1771_s22), 1 }
   0xc   : > { %1805 = vmatprep.subr.mxu0 %v1910_v2  ;;  %1807 = vmatprep.mubr.msk.f32.mxu0 %vm1911_vm1, %v1910_v2  ;;  %v1975_v4 = vld [vmem:[%s2285_s3] sm:$0xf]  ;;  %s1980_s27 = sshll.u32 %s2290_s22, 3  ;;  %vm268_vm2 = vcmask 31744   ;;  %v1913_v20 = vmov 1966171168  }
   0xd   : > { %1806 = vmatpush3.msk.msra.mxu0 %vm272_vm0, %v266_v0  ;;  %v1969_v3 = vshrl.u32 %v346_v1, 7  ;;  %1810 = vmatprep.subr.mxu1 %v1910_v2  ;;  %s255_s30 = scalar_lea.vmem %s2282_s0, %s1980_s27  ;;  %s259_s10 = scalar_lea.vmem %s2283_s1, %s1980_s27  ;;  %v363_v21 = vunpack.c.l.s4 %v1913_v20  ;;  %vm534_vm11 = vcmask 261120   ;;  %vm708_vm12 = vcmask 1041409  }
   0xe   : > { %1815 = vmatprep.subr.mxu0 %v1910_v2  ;;  %1812 = vmatprep.mubr.msk.f32.mxu1 %vm1911_vm1, %v1910_v2  ;;  %v264_v6 = vld [vmem:[%s255_s30] sm:$0xff]  ;;  %vm710_vm13 = vcmask 1042434   ;;  %vm712_vm14 = vcmask 1043459   ;;  %vm714_vm15 = vcmask 1044484   ;;  %vm716_vm0 = vcmask 1045509   ;;  %s263_s28 = scalar_lea.vmem %s2288_s6, %s1980_s27 }
   0xf   : > { %v1983_v5 = vsub.s32 1, %v1969_v3  ;;  %1808 = vmatmul.mubr.msk.f32.vlgmr.msra.gmra.mxu0 %vm268_vm2, %v264_v6  ;;  %v1995_v8 = vsub.s32 2, %v1969_v3  ;;  %v265_v10 = vld [vmem:[%s259_s10] sm:$0xff]  ;;  %v2008_v14 = vsub.s32 0, %v1969_v3  ;;  %v364_v23 = vunpack.c.0.s8 %v363_v21 }
  0x10   : > { %1817 = vmatprep.mubr.msk.f32.mxu0 %vm1911_vm1, %v1910_v2  ;;  %v1781_v11 = vadd.f32 -1.0, %v265_v10 }
  0x11   : > { %v354_v7 = vrot.slane %v1975_v4, %v1983_v5  ;;  %v489_v9 = vrot.slane %v1975_v4, %v1995_v8  ;;  %v349_v15 = vrot.slane %v1975_v4, %v2008_v14  ;;  %v2016_v25 = vsub.s32 %v364_v23, %v1969_v3 }
  0x12   : > { %v2003_v12 = vmul.f32 1e+30, %v1781_v11  ;;  %v2033_v23 = vsub.s32 3, %v1969_v3 }
  0x13   : > { %356 = vrot.lane.b32.xlu0 %v354_v7, %s1912_s7  ;;  %491 = vrot.lane.b32.xlu1 %v489_v9, %s1912_s7 }
  0x14   : > { %v580_v13 = vrot.slane %v2003_v12, %v1983_v5  ;;  %v573_v19 = vrot.slane %v2003_v12, %v2008_v14 }
  0x17   : > { %582 = vbcast.lane.b32.xlu1 %v580_v13, 256 }
  0x85   : > { %v357_v22 = vpop.permute.xlu0 %356  ;;  %v492_v53 = vpop.permute.xlu1 %491 }
  0xcf   : > { %v342_v16 = vpop.f32.mrf.mxu0 }
  0xd0   : > { %v350_v17 = vadd.f32 %v349_v15, %v342_v16  ;;  %v359_v24 = vadd.f32 %v357_v22, %v342_v16 }
  0xd1   : > { %v1809_v18 = vpop.f32.mrf.mxu0 }
  0xd2   : > { %451 = vrot.lane.b32.xlu0 %v350_v17, %s1912_s7  ;;  %1811 = vmatpush3.msra.mxu1 %v350_v17  ;;  %v361_v26 = vcombine.high %v359_v24, %v359_v24  ;;  %v368_v27 = vrot.slane %v359_v24, %v2016_v25 }
  0xd3   : > { %1820 = vmatprep.subr.mxu1 %v1910_v2 }
  0xd4   : > { %v375_v28 = vrot.slane %v361_v26, %v2016_v25  ;;  %v376_v29 = vcombine.high %v368_v27, %v368_v27  ;;  %v384_v31 = vrot.slane %v368_v27, %v2016_v25  ;;  %v587_v27 = vrot.slane %v2003_v12, %v1995_v8 }
  0xd6   : > { %575 = vbcast.lane.b32.xlu0 %v573_v19, 256  ;;  %v377_v30 = vcombine.high %v375_v28, %v375_v28  ;;  %v398_v32 = vrot.slane %v376_v29, %v2016_v25  ;;  %v406_v34 = vcombine.high %v384_v31, %v384_v31  ;;  %v391_v36 = vrot.slane %v375_v28, %v2016_v25 }
  0xd7   : > { %v413_v38 = vrot.slane %v384_v31, %v2008_v14  ;;  %v2038_v28 = vsub.s32 4, %v1969_v3  ;;  %v594_v29 = vrot.slane %v2003_v12, %v2033_v23 }
  0xd8   : > { %v405_v33 = vrot.slane %v377_v30, %v2016_v25  ;;  %v408_v35 = vcombine.high %v398_v32, %v398_v32  ;;  %v417_v39 = vrot.slane %v398_v32, %v2008_v14  ;;  %v421_v40 = vrot.slane %v406_v34, %v2008_v14 }
  0xd9   : > { %v407_v42 = vcombine.high %v391_v36, %v391_v36  ;;  %v429_v43 = vrot.slane %v391_v36, %v2008_v14  ;;  %v2043_v30 = vsub.s32 5, %v1969_v3  ;;  %v601_v31 = vrot.slane %v2003_v12, %v2038_v28 }
  0xda   : > { %v409_v37 = vcombine.high %v405_v33, %v405_v33  ;;  %v425_v41 = vrot.slane %v408_v35, %v2008_v14  ;;  %v433_v45 = vrot.slane %v405_v33, %v2008_v14  ;;  %v2049_v33 = vpop.permute.xlu1 %582 }
  0xdb   : > { %v437_v60 = vrot.slane %v407_v42, %v2008_v14  ;;  %v608_v32 = vrot.slane %v2003_v12, %v2043_v30 }
  0xdc   : > { %v441_v52 = vrot.slane %v409_v37, %v2008_v14 }
 0x144   : > { %v452_v44 = vpop.permute.xlu0 %451 }
 0x145   : > { %v455_v46 = vadd.f32 %v452_v44, %v417_v39  ;;  %v454_v47 = vadd.f32 %v452_v44, %v413_v38  ;;  %v457_v48 = vadd.f32 %v452_v44, %v425_v41  ;;  %v456_v49 = vadd.f32 %v452_v44, %v421_v40 }
 0x146   : > { %v459_v50 = vadd.f32 %v452_v44, %v433_v45  ;;  %v458_v51 = vadd.f32 %v452_v44, %v429_v43  ;;  %v461_v63 = vadd.f32 %v452_v44, %v441_v52  ;;  %v460_v9 = vadd.f32 %v452_v44, %v437_v60 }
 0x147   : > { %vm463_vm3 = vcmp.gt.f32.partialorder %v455_v46, 0.0  ;;  %v471_v54 = vmul.f32 0.2, %v455_v46  ;;  %vm462_vm4 = vcmp.gt.f32.partialorder %v454_v47, 0.0  ;;  %v470_v55 = vmul.f32 0.2, %v454_v47 }
 0x148   : > { %vm465_vm5 = vcmp.gt.f32.partialorder %v457_v48, 0.0  ;;  %v473_v56 = vmul.f32 0.2, %v457_v48  ;;  %vm464_vm6 = vcmp.gt.f32.partialorder %v456_v49, 0.0  ;;  %v472_v57 = vmul.f32 0.2, %v456_v49  ;;  %v2051_v34 = vpop.permute.xlu0 %575 }
 0x149   : > { %v479_v58 = vsel %vm463_vm3, %v455_v46, %v471_v54  ;;  %v478_v59 = vsel %vm462_vm4, %v454_v47, %v470_v55  ;;  %v475_v7 = vmul.f32 0.2, %v459_v50  ;;  %vm467_vm7 = vcmp.gt.f32.partialorder %v459_v50, 0.0 }
 0x14a   : > { %v495_v61 = vmul.f32 %v492_v53, %v479_v58  ;;  %v494_v62 = vmul.f32 %v492_v53, %v478_v59  ;;  %v481_v0 = vsel %vm465_vm5, %v457_v48, %v473_v56  ;;  %v480_v6 = vsel %vm464_vm6, %v456_v49, %v472_v57 }
 0x14b   : > { %vm466_vm8 = vcmp.gt.f32.partialorder %v458_v51, 0.0  ;;  %v474_v10 = vmul.f32 0.2, %v458_v51  ;;  %v497_v11 = vmul.f32 %v492_v53, %v481_v0  ;;  %v496_v13 = vmul.f32 %v492_v53, %v480_v6 }
 0x14c   : > { %512 = vrot.lane.b32.xlu0 %v495_v61, %s1914_s11  ;;  %510 = vrot.lane.b32.xlu1 %v494_v62, %s1914_s11  ;;  %v483_v15 = vsel %vm467_vm7, %v459_v50, %v475_v7  ;;  %v477_v17 = vmul.f32 0.2, %v461_v63  ;;  %v476_v18 = vmul.f32 0.2, %v460_v9  ;;  %vm469_vm9 = vcmp.gt.f32.partialorder %v461_v63, 0.0 }
 0x14d   : > { %v482_v16 = vsel %vm466_vm8, %v458_v51, %v474_v10  ;;  %vm468_vm10 = vcmp.gt.f32.partialorder %v460_v9, 0.0  ;;  %v499_v19 = vmul.f32 %v492_v53, %v483_v15  ;;  %v1915_v51 = vmov 0  }
 0x14e   : > { %v498_v20 = vmul.f32 %v492_v53, %v482_v16  ;;  %v485_v21 = vsel %vm469_vm9, %v461_v63, %v477_v17  ;;  %v484_v22 = vsel %vm468_vm10, %v460_v9, %v476_v18  ;;  %1859 = vset.pattern.permute.xlu0 %v1915_v51  ;;  %1858 = vset.pattern.permute.xlu1 %v1915_v51  ;;  %v2062_v52 = vsub.s32 6, %v1969_v3 }
 0x14f   : > { %v501_v24 = vmul.f32 %v492_v53, %v485_v21  ;;  %v500_v26 = vmul.f32 %v492_v53, %v484_v22  ;;  %v2067_v54 = vsub.s32 7, %v1969_v3  ;;  %v675_v21 = vand.u32 127, %v346_v1 }
 0x150   : > { %516 = vrot.lane.b32.xlu0 %v497_v11, %s1914_s11  ;;  %514 = vrot.lane.b32.xlu1 %v496_v13, %s1914_s11  ;;  %v615_v53 = vrot.slane %v2003_v12, %v2062_v52  ;;  %vm718_vm3 = vcmask 1046534   ;;  %vm720_vm4 = vcmask 1047559   ;;  %vm723_vm5 = vcmask 64512  }
 0x151   : > { %v622_v55 = vrot.slane %v2003_v12, %v2067_v54 }
 0x154   : > { %520 = vrot.lane.b32.xlu0 %v499_v19, %s1914_s11  ;;  %518 = vrot.lane.b32.xlu1 %v498_v20, %s1914_s11 }
 0x158   : > { %524 = vrot.lane.b32.xlu0 %v501_v24, %s1914_s11  ;;  %522 = vrot.lane.b32.xlu1 %v500_v26, %s1914_s11  ;;  %v2111_v24 = vsub.s32 %v675_v21, %v1969_v3 }
 0x15c   : > { %589 = vbcast.lane.b32.xlu1 %v587_v27, 256  ;;  %596 = vbcast.lane.b32.xlu0 %v594_v29, 256 }
 0x160   : > { %603 = vbcast.lane.b32.xlu1 %v601_v31, 256  ;;  %610 = vbcast.lane.b32.xlu0 %v608_v32, 256 }
 0x1be   : > { %v511_v35 = vpop.permute.xlu1 %510  ;;  %v513_v36 = vpop.permute.xlu0 %512 }
 0x1bf   : > { %v535_v37 = vsel %vm534_vm11, %v511_v35, 0.0  ;;  %v538_v38 = vsel %vm534_vm11, %v513_v36, 0.0 }
 0x1c0   : > { %536 = vadd.xlane.f32.xlu1 %v535_v37  ;;  %539 = vadd.xlane.f32.xlu0 %v538_v38 }
 0x1c2   : > { %v515_v39 = vpop.permute.xlu1 %514  ;;  %v517_v40 = vpop.permute.xlu0 %516 }
 0x1c3   : > { %v541_v41 = vsel %vm534_vm11, %v515_v39, 0.0  ;;  %v544_v42 = vsel %vm534_vm11, %v517_v40, 0.0 }
 0x1c4   : > { %542 = vadd.xlane.f32.xlu0 %v541_v41  ;;  %545 = vadd.xlane.f32.xlu1 %v544_v42 }
 0x1c6   : > { %v519_v43 = vpop.permute.xlu1 %518  ;;  %v521_v44 = vpop.permute.xlu0 %520 }
 0x1c7   : > { %v547_v45 = vsel %vm534_vm11, %v519_v43, 0.0  ;;  %v550_v46 = vsel %vm534_vm11, %v521_v44, 0.0 }
 0x1c8   : > { %548 = vadd.xlane.f32.xlu0 %v547_v45  ;;  %551 = vadd.xlane.f32.xlu1 %v550_v46 }
 0x1ca   : > { %v523_v47 = vpop.permute.xlu1 %522  ;;  %v525_v48 = vpop.permute.xlu0 %524 }
 0x1cb   : > { %v553_v49 = vsel %vm534_vm11, %v523_v47, 0.0  ;;  %v556_v50 = vsel %vm534_vm11, %v525_v48, 0.0 }
 0x1cc   : > { %554 = vadd.xlane.f32.xlu0 %v553_v49  ;;  %557 = vadd.xlane.f32.xlu1 %v556_v50 }
 0x1ce   : > { %v2071_v56 = vpop.permute.xlu1 %589  ;;  %v2073_v57 = vpop.permute.xlu0 %596 }
 0x1d2   : > { %v2075_v58 = vpop.permute.xlu1 %603  ;;  %v2077_v59 = vpop.permute.xlu0 %610 }
 0x1dd   : > { %617 = vbcast.lane.b32.xlu1 %v615_v53, 256 }
 0x1e2   : > { %624 = vbcast.lane.b32.xlu0 %v622_v55, 256 }
 0x249   : > { %v537_v60 = vpop.xlane.xlu1 %536  ;;  %v540_v61 = vpop.xlane.xlu0 %539 }
 0x24a   : > { %v2080_v62 = vadd.f32 %v2051_v34, %v537_v60  ;;  %v2083_v63 = vadd.f32 %v2049_v33, %v540_v61 }
 0x24c   : > { %651 = vperm.xlu1 %1858, %v2080_v62   ;;  %654 = vperm.xlu0 %1859, %v2083_v63  }
 0x24d   : > { %v546_v12 = vpop.xlane.xlu1 %545  ;;  %v543_v0 = vpop.xlane.xlu0 %542 }
 0x24e   : > { %v636_v6 = vadd.f32 %v2071_v56, %v543_v0  ;;  %v637_v10 = vadd.f32 %v2073_v57, %v546_v12 }
 0x250   : > { %657 = vperm.xlu1 %1858, %v636_v6  }
 0x251   : > { %v552_v7 = vpop.xlane.xlu1 %551  ;;  %v549_v9 = vpop.xlane.xlu0 %548 }
 0x252   : > { %v2090_v11 = vadd.f32 %v2075_v58, %v549_v9  ;;  %v2094_v16 = vadd.f32 %v2077_v59, %v552_v7 }
 0x254   : > { %660 = vperm.xlu1 %1858, %v637_v10   ;;  %663 = vperm.xlu0 %1859, %v2090_v11  }
 0x255   : > { %v558_v13 = vpop.xlane.xlu1 %557  ;;  %v555_v15 = vpop.xlane.xlu0 %554 }
 0x258   : > { %666 = vperm.xlu1 %1858, %v2094_v16  }
 0x259   : > { %v2097_v17 = vpop.permute.xlu1 %617  ;;  %v2099_v18 = vpop.permute.xlu0 %624 }
 0x25a   : > { %v2102_v19 = vadd.f32 %v2097_v17, %v555_v15  ;;  %v2105_v20 = vadd.f32 %v2099_v18, %v558_v13 }
 0x25c   : > { %669 = vperm.xlu0 %1859, %v2102_v19   ;;  %672 = vperm.xlu1 %1858, %v2105_v20  }
 0x2c7   : > { %v652_v22 = vpop.permute.xlu1 %651  ;;  %v655_v27 = vpop.permute.xlu0 %654 }
 0x2c8   : > { %v679_v29 = vrot.slane %v652_v22, %v2111_v24  ;;  %v683_v31 = vrot.slane %v655_v27, %v2111_v24 }
 0x2ca   : > { %v709_v1 = vsel %vm708_vm12, %v683_v31, %v679_v29 }
 0x2cb   : > { %v658_v26 = vpop.permute.xlu1 %657 }
 0x2cc   : > { %v687_v35 = vrot.slane %v658_v26, %v2111_v24 }
 0x2ce   : > { %v711_v3 = vsel %vm710_vm13, %v687_v35, %v709_v1 }
 0x2cf   : > { %v661_v32 = vpop.permute.xlu1 %660  ;;  %v664_v37 = vpop.permute.xlu0 %663 }
 0x2d0   : > { %v691_v36 = vrot.slane %v661_v32, %v2111_v24  ;;  %v695_v39 = vrot.slane %v664_v37, %v2111_v24 }
 0x2d2   : > { %v713_v40 = vsel %vm712_vm14, %v691_v36, %v711_v3 }
 0x2d3   : > { %v667_v38 = vpop.permute.xlu1 %666  ;;  %v715_v44 = vsel %vm714_vm15, %v695_v39, %v713_v40  ;;  %v1916_v40 = vmov 1.0  }
 0x2d4   : > { %v699_v41 = vrot.slane %v667_v38, %v2111_v24  ;;  %1816 = vmatpush3.msra.mxu0 %v1916_v40 }
 0x2d5   : > { %1831 = vmatprep.subr.mxu0 %v1910_v2 }
 0x2d6   : > { %v717_v47 = vsel %vm716_vm0, %v699_v41, %v715_v44 }
 0x2d7   : > { %v673_v42 = vpop.permute.xlu1 %672  ;;  %v670_v43 = vpop.permute.xlu0 %669 }
 0x2d8   : > { %v707_v45 = vrot.slane %v673_v42, %v2111_v24  ;;  %v703_v46 = vrot.slane %v670_v43, %v2111_v24 }
 0x2da   : > { %v719_v48 = vsel %vm718_vm3, %v703_v46, %v717_v47 }
 0x2db   : > { %v721_v49 = vsel %vm720_vm4, %v707_v45, %v719_v48 }
 0x2dc   : > { %v724_v50 = vsel %vm723_vm5, %v721_v49, -inf }
 0x2dd   : > { %725 = vmax.xlane.f32.xlu0 %v724_v50 }
 0x366   : > { %v726_v51 = vpop.xlane.xlu0 %725 }
 0x367   : > { %v731_v53 = vrot.slane %v726_v51, %v2008_v14  ;;  %v735_v55 = vrot.slane %v726_v51, %v1983_v5  ;;  %v739_v60 = vrot.slane %v726_v51, %v1995_v8  ;;  %v743_v7 = vrot.slane %v726_v51, %v2033_v23 }
 0x368   : > { %v747_v15 = vrot.slane %v726_v51, %v2038_v28  ;;  %v751_v26 = vrot.slane %v726_v51, %v2043_v30  ;;  %v759_v32 = vrot.slane %v726_v51, %v2067_v54 }
 0x369   : > { %v768_v61 = vsub.f32 %v2080_v62, %v731_v53  ;;  %v769_v12 = vsub.f32 %v2083_v63, %v735_v55  ;;  %v770_v9 = vsub.f32 %v636_v6, %v739_v60  ;;  %v771_v21 = vsub.f32 %v637_v10, %v743_v7 }
 0x36a   : > { %v772_v27 = vsub.f32 %v2090_v11, %v747_v15  ;;  %v755_v62 = vrot.slane %v726_v51, %v2062_v52  ;;  %v773_v63 = vsub.f32 %v2094_v16, %v751_v26  ;;  %v775_v11 = vsub.f32 %v2105_v20, %v759_v32  ;;  %v1025_v26 = vld [vmem:[%s2286_s4 + $0x18] sm:$0xff] }
 0x36b   : > { %v776_v0 = vmul.f32 1.442695, %v768_v61  ;;  %v778_v13 = vmul.f32 1.442695, %v769_v12  ;;  %v780_v22 = vmul.f32 1.442695, %v770_v9 }
 0x36c   : > { %v782_v29 = vmul.f32 1.442695, %v771_v21  ;;  %v784_v31 = vmul.f32 1.442695, %v772_v27  ;;  %v774_v10 = vsub.f32 %v2102_v19, %v755_v62  ;;  %v786_v35 = vmul.f32 1.442695, %v773_v63 }
 0x36d   : > { %1860 = vpow2.f32 %v776_v0  ;;  %v790_v16 = vmul.f32 1.442695, %v775_v11  ;;  %v1024_v27 = vld [vmem:[%s2286_s4 + $0x10] sm:$0xff]  ;;  %v1015_v11 = vrot.slane %v1975_v4, %v2033_v23 }
 0x36e   : > { %1862 = vpow2.f32 %v778_v13  ;;  %v788_v37 = vmul.f32 1.442695, %v774_v10  ;;  %v2184_v10 = vld [vmem:[%s2287_s5] sm:$0xf] }
 0x36f   : > { %1864 = vpow2.f32 %v780_v22  ;;  %v1243_v4 = vrot.slane %v2184_v10, %v1995_v8 }
 0x370   : > { %1866 = vpow2.f32 %v782_v29  ;;  %v1023_v29 = vld [vmem:[%s2286_s4 + $0x8] sm:$0xff] }
 0x371   : > { %1868 = vpow2.f32 %v784_v31  ;;  %v1022_v31 = vld [vmem:[%s2286_s4] sm:$0xff] }
 0x372   : > { %1870 = vpow2.f32 %v786_v35  ;;  %v1108_v35 = vrot.slane %v2184_v10, %v1983_v5 }
 0x373   : > { %1872 = vpow2.f32 %v788_v37 }
 0x374   : > { %1874 = vpow2.f32 %v790_v16 }
 0x37a   : > { %v1861_v6 = vpop.eup %1860 }
 0x37b   : > { %801 = vperm.xlu1 %1858, %v1861_v6   ;;  %v1863_v36 = vpop.eup %1862 }
 0x37c   : > { %v1865_v1 = vpop.eup %1864 }
 0x37d   : > { %v1867_v38 = vpop.eup %1866 }
 0x37e   : > { %v1869_v3 = vpop.eup %1868 }
 0x37f   : > { %804 = vperm.xlu1 %1858, %v1863_v36   ;;  %v1871_v39 = vpop.eup %1870 }
 0x380   : > { %v1873_v19 = vpop.eup %1872 }
 0x381   : > { %v1875_v20 = vpop.eup %1874 }
 0x383   : > { %807 = vperm.xlu1 %1858, %v1865_v1  }
 0x387   : > { %810 = vperm.xlu1 %1858, %v1867_v38  }
 0x38b   : > { %813 = vperm.xlu1 %1858, %v1869_v3  }
 0x38f   : > { %816 = vperm.xlu1 %1858, %v1871_v39  }
 0x393   : > { %819 = vperm.xlu1 %1858, %v1873_v19  }
 0x397   : > { %822 = vperm.xlu1 %1858, %v1875_v20   ;;  %v1103_v20 = vrot.slane %v2184_v10, %v2008_v14 }
 0x39b   : > { %1110 = vrot.lane.b32.xlu1 %v1108_v35, %s1917_s23 }
 0x3f6   : > { %v802_v41 = vpop.permute.xlu1 %801 }
 0x3f7   : > { %v827_v49 = vrot.slane %v802_v41, %v2111_v24 }
 0x3fa   : > { %v805_v42 = vpop.permute.xlu1 %804 }
 0x3fb   : > { %v831_v47 = vrot.slane %v805_v42, %v2111_v24 }
 0x3fd   : > { %v856_v55 = vsel %vm708_vm12, %v831_v47, %v827_v49 }
 0x3fe   : > { %v808_v43 = vpop.permute.xlu1 %807 }
 0x3ff   : > { %v835_v48 = vrot.slane %v808_v43, %v2111_v24 }
 0x401   : > { %v857_v61 = vsel %vm710_vm13, %v835_v48, %v856_v55 }
 0x402   : > { %v811_v44 = vpop.permute.xlu1 %810 }
 0x403   : > { %v839_v50 = vrot.slane %v811_v44, %v2111_v24 }
 0x405   : > { %v858_v0 = vsel %vm712_vm14, %v839_v50, %v857_v61 }
 0x406   : > { %v814_v45 = vpop.permute.xlu1 %813 }
 0x407   : > { %v843_v51 = vrot.slane %v814_v45, %v2111_v24 }
 0x409   : > { %v859_v7 = vsel %vm714_vm15, %v843_v51, %v858_v0 }
 0x40a   : > { %v817_v46 = vpop.permute.xlu1 %816 }
 0x40b   : > { %v847_v60 = vrot.slane %v817_v46, %v2111_v24 }
 0x40d   : > { %v860_v13 = vsel %vm716_vm0, %v847_v60, %v859_v7 }
 0x40e   : > { %v820_v53 = vpop.permute.xlu1 %819 }
 0x40f   : > { %v851_v12 = vrot.slane %v820_v53, %v2111_v24 }
 0x411   : > { %v861_v21 = vsel %vm718_vm3, %v851_v12, %v860_v13 }
 0x412   : > { %v823_v9 = vpop.permute.xlu1 %822 }
 0x413   : > { %v855_v15 = vrot.slane %v823_v9, %v2111_v24 }
 0x415   : > { %v862_v22 = vsel %vm720_vm4, %v855_v15, %v861_v21 }
 0x416   : > { %1813 = vmatmul.mubr.msk.f32.vlgmr.msra.gmra.mxu1 %vm723_vm5, %v862_v22  ;;  %1818 = vmatmul.mubr.msk.f32.vlgmr.msra.gmra.mxu0 %vm723_vm5, %v862_v22  ;;  %v1111_v44 = vpop.permute.xlu1 %1110 }
 0x417   : > { %1828 = vmatprep.mubr.msk.f32.mxu1 %vm1911_vm1, %v1910_v2  ;;  %1833 = vmatprep.mubr.msk.f32.mxu0 %vm1911_vm1, %v1910_v2 }
 0x418   : > { %1821 = vmatpush3.msra.mxu1 %v1025_v26 }
 0x419   : > { %1822 = vmatprep.subr.mxu1 %v1910_v2 }
 0x41a   : > { %1823 = vmatpush3.msra.mxu1 %v1024_v27 }
 0x41b   : > { %1824 = vmatprep.subr.mxu1 %v1910_v2 }
 0x41c   : > { %1825 = vmatpush3.msra.mxu1 %v1023_v29 }
 0x41d   : > { %1826 = vmatprep.subr.mxu1 %v1910_v2 }
 0x41e   : > { %1827 = vmatpush3.msra.mxu1 %v1022_v31 }
 0x4d6   : > { %v931_v62 = vpop.f32.mrf.mxu1  ;;  %v1001_v63 = vpop.f32.mrf.mxu0 }
 0x4d7   : > { %1007 = vperm.xlu0 %1859, %v1001_v63  }
 0x4d8   : > { %v1814_v6 = vpop.f32.mrf.mxu1  ;;  %v1819_v32 = vpop.f32.mrf.mxu0 }
 0x552   : > { %v1008_v36 = vpop.permute.xlu0 %1007 }
 0x553   : > { %1876 = vrcp.f32 %v1008_v36 }
 0x560   : > { %v1877_v37 = vpop.eup %1876 }
 0x561   : > { %v1011_v1 = vmul.f32 %v1877_v37, %v931_v62 }
 0x563   : > { %v1016_v16 = vadd.f32 %v1015_v11, %v1011_v1 }
 0x565   : > { %v1018_v38 = vmul.f32 1.442695, %v1016_v16  ;;  %vm1017_vm6 = vcmp.gt.f32.partialorder %v1016_v16, 0.0 }
 0x567   : > { %1878 = vpow2.f32 %v1018_v38 }
 0x574   : > { %v1879_v3 = vpop.eup %1878 }
 0x575   : > { %v1784_v39 = vadd.f32 -1.0, %v1879_v3 }
 0x577   : > { %v1021_v19 = vsel %vm1017_vm6, %v1016_v16, %v1784_v39 }
 0x578   : > { %1829 = vmatmul.mubr.msk.f32.vlgmr.msra.gmra.mxu1 %vm534_vm11, %v1021_v19 }
 0x638   : > { %v1096_v41 = vpop.f32.mrf.mxu1 }
 0x639   : > { %v1104_v42 = vadd.f32 %v1103_v20, %v1096_v41  ;;  %v1113_v45 = vadd.f32 %v1111_v44, %v1096_v41 }
 0x63a   : > { %v1830_v43 = vpop.f32.mrf.mxu1 }
 0x63b   : > { %1205 = vrot.lane.b32.xlu1 %v1104_v42, %s1917_s23  ;;  %1832 = vmatpush3.msra.mxu0 %v1104_v42  ;;  %v1115_v46 = vcombine.high %v1113_v45, %v1113_v45  ;;  %v1122_v47 = vrot.slane %v1113_v45, %v2016_v25 }
 0x63c   : > { %1836 = vmatprep.subr.mxu0 %v1910_v2 }
 0x63d   : > { %v1129_v48 = vrot.slane %v1115_v46, %v2016_v25  ;;  %v1130_v49 = vcombine.high %v1122_v47, %v1122_v47  ;;  %v1138_v53 = vrot.slane %v1122_v47, %v2016_v25 }
 0x63f   : > { %1245 = vrot.lane.b32.xlu1 %v1243_v4, %s1917_s23  ;;  %v1131_v50 = vcombine.high %v1129_v48, %v1129_v48  ;;  %v1152_v51 = vrot.slane %v1130_v49, %v2016_v25  ;;  %v1160_v61 = vcombine.high %v1138_v53, %v1138_v53  ;;  %v1167_v0 = vrot.slane %v1138_v53, %v2008_v14 }
 0x640   : > { %v1145_v15 = vrot.slane %v1129_v48, %v2016_v25 }
 0x641   : > { %v1159_v55 = vrot.slane %v1131_v50, %v2016_v25  ;;  %v1162_v60 = vcombine.high %v1152_v51, %v1152_v51  ;;  %v1171_v7 = vrot.slane %v1152_v51, %v2008_v14  ;;  %v1175_v21 = vrot.slane %v1160_v61, %v2008_v14 }
 0x642   : > { %v1161_v37 = vcombine.high %v1145_v15, %v1145_v15  ;;  %v1183_v1 = vrot.slane %v1145_v15, %v2008_v14 }
 0x643   : > { %v1163_v12 = vcombine.high %v1159_v55, %v1159_v55  ;;  %v1179_v9 = vrot.slane %v1162_v60, %v2008_v14  ;;  %v1187_v13 = vrot.slane %v1159_v55, %v2008_v14 }
 0x644   : > { %v1191_v4 = vrot.slane %v1161_v37, %v2008_v14 }
 0x645   : > { %v1195_v26 = vrot.slane %v1163_v12, %v2008_v14 }
 0x6ad   : > { %v1206_v22 = vpop.permute.xlu1 %1205 }
 0x6ae   : > { %v1211_v27 = vadd.f32 %v1206_v22, %v1179_v9  ;;  %v1208_v29 = vadd.f32 %v1206_v22, %v1167_v0  ;;  %v1213_v62 = vadd.f32 %v1206_v22, %v1187_v13  ;;  %v1209_v63 = vadd.f32 %v1206_v22, %v1171_v7 }
 0x6af   : > { %v1215_v31 = vadd.f32 %v1206_v22, %v1195_v26  ;;  %v1210_v6 = vadd.f32 %v1206_v22, %v1175_v21  ;;  %v1212_v42 = vadd.f32 %v1206_v22, %v1183_v1  ;;  %v1214_v49 = vadd.f32 %v1206_v22, %v1191_v4 }
 0x6b0   : > { %vm1219_vm7 = vcmp.gt.f32.partialorder %v1211_v27, 0.0  ;;  %v1227_v32 = vmul.f32 0.2, %v1211_v27  ;;  %vm1216_vm8 = vcmp.gt.f32.partialorder %v1208_v29, 0.0  ;;  %v1224_v35 = vmul.f32 0.2, %v1208_v29 }
 0x6b1   : > { %v1246_v36 = vpop.permute.xlu1 %1245  ;;  %vm1221_vm9 = vcmp.gt.f32.partialorder %v1213_v62, 0.0  ;;  %v1229_v11 = vmul.f32 0.2, %v1213_v62  ;;  %vm1217_vm10 = vcmp.gt.f32.partialorder %v1209_v63, 0.0  ;;  %v1225_v25 = vmul.f32 0.2, %v1209_v63 }
 0x6b2   : > { %v1235_v16 = vsel %vm1219_vm7, %v1211_v27, %v1227_v32  ;;  %v1232_v38 = vsel %vm1216_vm8, %v1208_v29, %v1224_v35  ;;  %v1231_v41 = vmul.f32 0.2, %v1215_v31  ;;  %vm1223_vm11 = vcmp.gt.f32.partialorder %v1215_v31, 0.0 }
 0x6b3   : > { %v1251_v3 = vmul.f32 %v1246_v36, %v1235_v16  ;;  %v1248_v39 = vmul.f32 %v1246_v36, %v1232_v38  ;;  %v1237_v19 = vsel %vm1221_vm9, %v1213_v62, %v1229_v11  ;;  %v1233_v20 = vsel %vm1217_vm10, %v1209_v63, %v1225_v25 }
 0x6b4   : > { %vm1218_vm6 = vcmp.gt.f32.partialorder %v1210_v6, 0.0  ;;  %v1226_v43 = vmul.f32 0.2, %v1210_v6  ;;  %v1253_v44 = vmul.f32 %v1246_v36, %v1237_v19  ;;  %v1249_v45 = vmul.f32 %v1246_v36, %v1233_v20 }
 0x6b5   : > { %1270 = vrot.lane.b32.xlu0 %v1251_v3, %s1918_s24  ;;  %1264 = vrot.lane.b32.xlu1 %v1248_v39, %s1918_s24  ;;  %v1239_v46 = vsel %vm1223_vm11, %v1215_v31, %v1231_v41  ;;  %v1228_v48 = vmul.f32 0.2, %v1212_v42  ;;  %vm1220_vm7 = vcmp.gt.f32.partialorder %v1212_v42, 0.0  ;;  %v1230_v55 = vmul.f32 0.2, %v1214_v49 }
 0x6b6   : > { %v1234_v47 = vsel %vm1218_vm6, %v1210_v6, %v1226_v43  ;;  %v1255_v50 = vmul.f32 %v1246_v36, %v1239_v46  ;;  %vm1222_vm8 = vcmp.gt.f32.partialorder %v1214_v49, 0.0 }
 0x6b7   : > { %v1250_v51 = vmul.f32 %v1246_v36, %v1234_v47  ;;  %v1236_v53 = vsel %vm1220_vm7, %v1212_v42, %v1228_v48  ;;  %v1238_v61 = vsel %vm1222_vm8, %v1214_v49, %v1230_v55 }
 0x6b8   : > { %v1252_v60 = vmul.f32 %v1246_v36, %v1236_v53  ;;  %v1254_v12 = vmul.f32 %v1246_v36, %v1238_v61 }
 0x6b9   : > { %1274 = vrot.lane.b32.xlu0 %v1253_v44, %s1918_s24  ;;  %1266 = vrot.lane.b32.xlu1 %v1249_v45, %s1918_s24 }
 0x6bd   : > { %1278 = vrot.lane.b32.xlu0 %v1255_v50, %s1918_s24  ;;  %1268 = vrot.lane.b32.xlu1 %v1250_v51, %s1918_s24 }
 0x6c1   : > { %1272 = vrot.lane.b32.xlu1 %v1252_v60, %s1918_s24 }
 0x6c5   : > { %1276 = vrot.lane.b32.xlu1 %v1254_v12, %s1918_s24 }
 0x727   : > { %v1265_v0 = vpop.permute.xlu1 %1264  ;;  %v1271_v15 = vpop.permute.xlu0 %1270 }
 0x728   : > { %v1288_v7 = vsel %vm268_vm2, %v1265_v0, 0.0  ;;  %v1297_v29 = vsel %vm268_vm2, %v1271_v15, 0.0 }
 0x729   : > { %1289 = vadd.xlane.f32.xlu1 %v1288_v7 }
 0x72b   : > { %v1267_v9 = vpop.permute.xlu1 %1266  ;;  %v1275_v26 = vpop.permute.xlu0 %1274 }
 0x72c   : > { %v1291_v13 = vsel %vm268_vm2, %v1267_v9, 0.0  ;;  %v1303_v31 = vsel %vm268_vm2, %v1275_v26, 0.0 }
 0x72d   : > { %1292 = vadd.xlane.f32.xlu0 %v1291_v13 }
 0x72f   : > { %v1269_v21 = vpop.permute.xlu1 %1268  ;;  %v1279_v32 = vpop.permute.xlu0 %1278 }
 0x730   : > { %v1294_v22 = vsel %vm268_vm2, %v1269_v21, 0.0  ;;  %v1309_v35 = vsel %vm268_vm2, %v1279_v32, 0.0 }
 0x731   : > { %1295 = vadd.xlane.f32.xlu0 %v1294_v22 }
 0x733   : > { %v1273_v27 = vpop.permute.xlu1 %1272 }
 0x734   : > { %v1300_v62 = vsel %vm268_vm2, %v1273_v27, 0.0 }
 0x735   : > { %1298 = vadd.xlane.f32.xlu0 %v1297_v29  ;;  %1301 = vadd.xlane.f32.xlu1 %v1300_v62 }
 0x737   : > { %v1277_v63 = vpop.permute.xlu1 %1276 }
 0x738   : > { %v1306_v6 = vsel %vm268_vm2, %v1277_v63, 0.0 }
 0x739   : > { %1304 = vadd.xlane.f32.xlu0 %v1303_v31  ;;  %1307 = vadd.xlane.f32.xlu1 %v1306_v6 }
 0x73d   : > { %1310 = vadd.xlane.f32.xlu0 %v1309_v35 }
 0x7b2   : > { %v1290_v36 = vpop.xlane.xlu1 %1289 }
 0x7b3   : > { %v1320_v11 = vadd.f32 %v1290_v36, %v2051_v34 }
 0x7b5   : > { %1337 = vperm.xlu1 %1858, %v1320_v11  }
 0x7b6   : > { %v1293_v25 = vpop.xlane.xlu0 %1292 }
 0x7b7   : > { %v1321_v37 = vadd.f32 %v1293_v25, %v2049_v33 }
 0x7b9   : > { %1340 = vperm.xlu0 %1859, %v1321_v37  }
 0x7ba   : > { %v1296_v1 = vpop.xlane.xlu0 %1295 }
 0x7bb   : > { %v1322_v16 = vadd.f32 %v1296_v1, %v2071_v56 }
 0x7bd   : > { %1343 = vperm.xlu1 %1858, %v1322_v16  }
 0x7be   : > { %v1299_v38 = vpop.xlane.xlu0 %1298  ;;  %v1302_v3 = vpop.xlane.xlu1 %1301 }
 0x7bf   : > { %v1323_v39 = vadd.f32 %v1299_v38, %v2073_v57  ;;  %v1324_v20 = vadd.f32 %v1302_v3, %v2075_v58 }
 0x7c1   : > { %1346 = vperm.xlu1 %1858, %v1323_v39  }
 0x7c2   : > { %v1305_v19 = vpop.xlane.xlu0 %1304  ;;  %v1308_v34 = vpop.xlane.xlu1 %1307 }
 0x7c3   : > { %v1325_v41 = vadd.f32 %v1305_v19, %v2077_v59  ;;  %v1326_v33 = vadd.f32 %v1308_v34, %v2097_v17 }
 0x7c5   : > { %1352 = vperm.xlu0 %1859, %v1325_v41   ;;  %1349 = vperm.xlu1 %1858, %v1324_v20  }
 0x7c6   : > { %v1311_v42 = vpop.xlane.xlu0 %1310 }
 0x7c7   : > { %v1327_v43 = vadd.f32 %v1311_v42, %v2099_v18 }
 0x7c9   : > { %1358 = vperm.xlu0 %1859, %v1327_v43   ;;  %1355 = vperm.xlu1 %1858, %v1326_v33  }
 0x830   : > { %v1338_v56 = vpop.permute.xlu1 %1337 }
 0x831   : > { %v1363_v59 = vrot.slane %v1338_v56, %v2111_v24 }
 0x834   : > { %v1341_v44 = vpop.permute.xlu0 %1340 }
 0x835   : > { %v1367_v57 = vrot.slane %v1341_v44, %v2111_v24 }
 0x837   : > { %v1392_v47 = vsel %vm708_vm12, %v1367_v57, %v1363_v59 }
 0x838   : > { %v1344_v4 = vpop.permute.xlu1 %1343 }
 0x839   : > { %v1371_v58 = vrot.slane %v1344_v4, %v2111_v24 }
 0x83b   : > { %v1393_v18 = vsel %vm710_vm13, %v1371_v58, %v1392_v47 }
 0x83c   : > { %v1347_v45 = vpop.permute.xlu1 %1346 }
 0x83d   : > { %v1375_v46 = vrot.slane %v1347_v45, %v2111_v24 }
 0x83f   : > { %v1394_v50 = vsel %vm712_vm14, %v1375_v46, %v1393_v18 }
 0x840   : > { %v1353_v48 = vpop.permute.xlu0 %1352  ;;  %v1350_v17 = vpop.permute.xlu1 %1349 }
 0x841   : > { %v1379_v49 = vrot.slane %v1350_v17, %v2111_v24  ;;  %v1383_v51 = vrot.slane %v1353_v48, %v2111_v24 }
 0x843   : > { %v1395_v53 = vsel %vm714_vm15, %v1379_v49, %v1394_v50 }
 0x844   : > { %v1359_v55 = vpop.permute.xlu0 %1358  ;;  %v1356_v60 = vpop.permute.xlu1 %1355  ;;  %v1396_v0 = vsel %vm716_vm0, %v1383_v51, %v1395_v53 }
 0x845   : > { %v1391_v61 = vrot.slane %v1359_v55, %v2111_v24  ;;  %v1387_v12 = vrot.slane %v1356_v60, %v2111_v24 }
 0x847   : > { %v1397_v7 = vsel %vm718_vm3, %v1387_v12, %v1396_v0 }
 0x848   : > { %v1398_v9 = vsel %vm720_vm4, %v1391_v61, %v1397_v7 }
 0x849   : > { %v1400_v13 = vsel %vm723_vm5, %v1398_v9, -inf }
 0x84a   : > { %1401 = vmax.xlane.f32.xlu1 %v1400_v13 }
 0x8d3   : > { %v1402_v15 = vpop.xlane.xlu1 %1401 }
 0x8d4   : > { %v1407_v21 = vrot.slane %v1402_v15, %v2008_v14  ;;  %v1411_v22 = vrot.slane %v1402_v15, %v1983_v5  ;;  %v1415_v26 = vrot.slane %v1402_v15, %v1995_v8  ;;  %v1419_v63 = vrot.slane %v1402_v15, %v2033_v23 }
 0x8d5   : > { %v1423_v32 = vrot.slane %v1402_v15, %v2038_v28  ;;  %v1427_v25 = vrot.slane %v1402_v15, %v2043_v30  ;;  %v1431_v8 = vrot.slane %v1402_v15, %v2062_v52 }
 0x8d6   : > { %v1444_v27 = vsub.f32 %v1320_v11, %v1407_v21  ;;  %v1445_v29 = vsub.f32 %v1321_v37, %v1411_v22  ;;  %v1446_v31 = vsub.f32 %v1322_v16, %v1415_v26  ;;  %v1447_v35 = vsub.f32 %v1323_v39, %v1419_v63 }
 0x8d7   : > { %v1448_v14 = vsub.f32 %v1324_v20, %v1423_v32  ;;  %v1449_v11 = vsub.f32 %v1325_v41, %v1427_v25  ;;  %v1435_v16 = vrot.slane %v1402_v15, %v2067_v54  ;;  %v1450_v38 = vsub.f32 %v1326_v33, %v1431_v8 }
 0x8d8   : > { %v1452_v62 = vmul.f32 1.442695, %v1444_v27  ;;  %v1454_v6 = vmul.f32 1.442695, %v1445_v29  ;;  %v1456_v36 = vmul.f32 1.442695, %v1446_v31 }
 0x8d9   : > { %v1458_v5 = vmul.f32 1.442695, %v1447_v35  ;;  %v1460_v37 = vmul.f32 1.442695, %v1448_v14  ;;  %v1462_v28 = vmul.f32 1.442695, %v1449_v11  ;;  %v1451_v39 = vsub.f32 %v1327_v43, %v1435_v16 }
 0x8da   : > { %1880 = vpow2.f32 %v1452_v62  ;;  %v1464_v30 = vmul.f32 1.442695, %v1450_v38 }
 0x8db   : > { %1882 = vpow2.f32 %v1454_v6  ;;  %v1466_v20 = vmul.f32 1.442695, %v1451_v39 }
 0x8dc   : > { %1884 = vpow2.f32 %v1456_v36 }
 0x8dd   : > { %1886 = vpow2.f32 %v1458_v5 }
 0x8de   : > { %1888 = vpow2.f32 %v1460_v37 }
 0x8df   : > { %1890 = vpow2.f32 %v1462_v28 }
 0x8e0   : > { %1892 = vpow2.f32 %v1464_v30 }
 0x8e1   : > { %1894 = vpow2.f32 %v1466_v20 }
 0x8e7   : > { %v1881_v1 = vpop.eup %1880 }
 0x8e8   : > { %1477 = vperm.xlu0 %1859, %v1881_v1   ;;  %v1883_v3 = vpop.eup %1882 }
 0x8e9   : > { %v1885_v19 = vpop.eup %1884 }
 0x8ea   : > { %v1887_v52 = vpop.eup %1886 }
 0x8eb   : > { %v1889_v41 = vpop.eup %1888 }
 0x8ec   : > { %1480 = vperm.xlu0 %1859, %v1883_v3   ;;  %v1891_v34 = vpop.eup %1890 }
 0x8ed   : > { %v1893_v54 = vpop.eup %1892 }
 0x8ee   : > { %v1895_v42 = vpop.eup %1894 }
 0x8f0   : > { %1483 = vperm.xlu0 %1859, %v1885_v19  }
 0x8f4   : > { %1486 = vperm.xlu0 %1859, %v1887_v52  }
 0x8f8   : > { %1489 = vperm.xlu0 %1859, %v1889_v41  }
 0x8fc   : > { %1492 = vperm.xlu0 %1859, %v1891_v34  }
 0x900   : > { %1495 = vperm.xlu0 %1859, %v1893_v54  }
 0x904   : > { %1498 = vperm.xlu0 %1859, %v1895_v42  }
 0x963   : > { %v1478_v33 = vpop.permute.xlu0 %1477 }
 0x964   : > { %v1503_v59 = vrot.slane %v1478_v33, %v2111_v24 }
 0x967   : > { %v1481_v56 = vpop.permute.xlu0 %1480 }
 0x968   : > { %v1507_v45 = vrot.slane %v1481_v56, %v2111_v24 }
 0x96a   : > { %v1532_v17 = vsel %vm708_vm12, %v1507_v45, %v1503_v59 }
 0x96b   : > { %v1484_v43 = vpop.permute.xlu0 %1483 }
 0x96c   : > { %v1511_v58 = vrot.slane %v1484_v43, %v2111_v24 }
 0x96e   : > { %v1533_v49 = vsel %vm710_vm13, %v1511_v58, %v1532_v17 }
 0x96f   : > { %v1487_v4 = vpop.permute.xlu0 %1486 }
 0x970   : > { %v1515_v46 = vrot.slane %v1487_v4, %v2111_v24 }
 0x972   : > { %v1534_v51 = vsel %vm712_vm14, %v1515_v46, %v1533_v49 }
 0x973   : > { %v1490_v44 = vpop.permute.xlu0 %1489 }
 0x974   : > { %v1519_v47 = vrot.slane %v1490_v44, %v2111_v24 }
 0x976   : > { %v1535_v53 = vsel %vm714_vm15, %v1519_v47, %v1534_v51 }
 0x977   : > { %v1493_v57 = vpop.permute.xlu0 %1492 }
 0x978   : > { %v1523_v18 = vrot.slane %v1493_v57, %v2111_v24 }
 0x97a   : > { %v1536_v60 = vsel %vm716_vm0, %v1523_v18, %v1535_v53 }
 0x97b   : > { %v1496_v48 = vpop.permute.xlu0 %1495 }
 0x97c   : > { %v1527_v50 = vrot.slane %v1496_v48, %v2111_v24 }
 0x97e   : > { %v1537_v12 = vsel %vm718_vm3, %v1527_v50, %v1536_v60 }
 0x97f   : > { %v1499_v55 = vpop.permute.xlu0 %1498 }
 0x980   : > { %v1531_v61 = vrot.slane %v1499_v55, %v2111_v24  ;;  %v1691_v24 = vrot.slane %v2184_v10, %v2033_v23 }
 0x982   : > { %v1538_v0 = vsel %vm720_vm4, %v1531_v61, %v1537_v12 }
 0x983   : > { %1834 = vmatmul.mubr.msk.f32.vlgmr.msra.gmra.mxu0 %vm723_vm5, %v1538_v0 }
 0x984   : > { %1837 = vmatpush3.msra.mxu0 %v1916_v40  ;;  %1838 = vmatprep.mubr.msk.f32.mxu0 %vm1911_vm1, %v1910_v2 }
 0x987   : > { %1839 = vmatmul.mubr.msk.f32.vlgmr.msra.gmra.mxu0 %vm723_vm5, %v1538_v0 }
 0xa43   : > { %v1607_v7 = vpop.f32.mrf.mxu0 }
 0xa45   : > { %v1835_v9 = vpop.f32.mrf.mxu0 }
 0xa47   : > { %v1677_v13 = vpop.f32.mrf.mxu0 }
 0xa48   : > { %1683 = vperm.xlu0 %1859, %v1677_v13  }
 0xa49   : > { %v1840_v15 = vpop.f32.mrf.mxu0 }
 0xac3   : > { %v1684_v21 = vpop.permute.xlu0 %1683 }
 0xac4   : > { %1896 = vrcp.f32 %v1684_v21 }
 0xad1   : > { %v1897_v22 = vpop.eup %1896 }
 0xad2   : > { %v1687_v26 = vmul.f32 %v1897_v22, %v1607_v7 }
 0xad4   : > { %v1692_v27 = vadd.f32 %v1691_v24, %v1687_v26 }
 0xad6   : > { %v1693_v40 = vsel %vm268_vm2, %v1692_v27, -inf }
 0xad7   : > { %1694 = vmax.xlane.f32.xlu1 %v1693_v40 }
 0xb60   : > { %v1695_v2 = vpop.xlane.xlu1 %1694 }
 0xb61   : > { %v1696_v29 = vsub.f32 %v1692_v27, %v1695_v2 }
 0xb63   : > { %v1697_v62 = vmul.f32 1.442695, %v1696_v29 }
 0xb65   : > { %1898 = vpow2.f32 %v1697_v62 }
 0xb72   : > { %v1899_v63 = vpop.eup %1898 }
 0xb73   : > { %v1699_v31 = vsel %vm268_vm2, %v1899_v63, 0.0 }
 0xb74   : > { %1700 = vadd.xlane.f32.xlu0 %v1699_v31 }
 0xbfd   : > { %v1701_v6 = vpop.xlane.xlu0 %1700 }
 0xbfe   : > { %1900 = vlog2.f32 %v1701_v6 }
 0xc0b   : > { %v1901_v32 = vpop.eup %1900 }
 0xc0c   : > { %v1703_v35 = vmul.f32 0.6931472, %v1901_v32 }
 0xc0e   : > { %v1704_v23 = vsub.f32 %v1696_v29, %v1703_v35 }
 0xc10   : > { %1705 = vst.msk [vmem:[%s263_s28] sm:$0xff] %vm268_vm2, %v1704_v23 }
 0xc11 PF: > { %s16_s21 = sadd.s32 1, %s1908_s21  }
 0xc12   : > { %p13_p4 = scmp.ge.s32.totalorder %s16_s21, 4  }
 0xc14   :  { %15 = sbr.rel (!%p13_p4) target bundleno = 1 (0x1), region = 77 }

</bundles_post_ra>
